<compile_context>
chip_gen: v5e
topology: v5e:2x2
jax: 0.10.0
libtpu: 0.0.40
codegen_flags: <defaults>
</compile_context>

<pallas_src>
import functools

import jax
import jax.numpy as jnp
from jax.experimental import pallas as pl
from jax.experimental.pallas import tpu as pltpu


# ----------------------------------------------------------------------------
# Kernel
# ----------------------------------------------------------------------------
def _mlp_kernel(x_ref, w1_ref, b1_ref, w2_ref, b2_ref,
                w3_ref, b3_ref, w4_ref, b4_ref, o_ref, *, compute_dtype):
    """Fused 4-layer MLP on a (features, batch_tile) tile.

    Batch lives on the lane (last) axis, so the (1, batch_tile) output block is
    lane-dense.  Matmul operands may be cast to `compute_dtype` (e.g. bf16) for
    the MXU fast path; accumulation, bias-add and ReLU are always float32.
    """
    cd = compute_dtype
    x = x_ref[...].astype(cd)                                    # (F, bt)

    h = jnp.dot(w1_ref[...].astype(cd), x,
                preferred_element_type=jnp.float32)              # (128, bt) f32
    h = jnp.maximum(h + b1_ref[...], 0.0)

    h = jnp.dot(w2_ref[...].astype(cd), h.astype(cd),
                preferred_element_type=jnp.float32)              # (64, bt)
    h = jnp.maximum(h + b2_ref[...], 0.0)

    h = jnp.dot(w3_ref[...].astype(cd), h.astype(cd),
                preferred_element_type=jnp.float32)              # (32, bt)
    h = jnp.maximum(h + b3_ref[...], 0.0)

    out = jnp.dot(w4_ref[...].astype(cd), h.astype(cd),
                  preferred_element_type=jnp.float32)            # (1, bt)
    o_ref[...] = (out + b4_ref[...]).astype(o_ref.dtype)


# ----------------------------------------------------------------------------
# Wrappers
# ----------------------------------------------------------------------------
def _pick_batch_tile(B, batch_tile):
    # Lane dim must stay a multiple of 128 (unmasked stores, aligned DMA), and
    # the grid should have >= 2 "parallel" steps so both v7x TensorCores work.
    half = ((B + 1) // 2 + 127) // 128 * 128
    return max(128, min(batch_tile, half))


def mlp_pallas(x, params, *, batch_tile=512, compute_dtype=jnp.float32):
    """x: (B, F) float32; params in PyTorch layout (w: (out,in), b: (out,1))."""
    B, F = x.shape
    bt = _pick_batch_tile(B, batch_tile)
    grid_b = pl.cdiv(B, bt)
    Bp = grid_b * bt

    # Layout plumbing in the wrapper: present a lane-dense (F, B) view of x.
    xt = x.T
    if Bp != B:
        xt = jnp.pad(xt, ((0, 0), (0, Bp - B)))
    if compute_dtype != jnp.float32:
        xt = xt.astype(compute_dtype)        # halves x DMA bytes for bf16

    w1, b1 = params["w1"], params["b1"]
    w2, b2 = params["w2"], params["b2"]
    w3, b3 = params["w3"], params["b3"]
    w4, b4 = params["w4"], params["b4"]

    # Whole-array blocks with constant index maps: the ~58 KiB of weights stay
    # resident in VMEM across all grid steps.
    full = lambda a: pl.BlockSpec(a.shape, lambda i: (0, 0))

    kernel = functools.partial(_mlp_kernel, compute_dtype=compute_dtype)

    out = pl.pallas_call(
        kernel,
        out_shape=jax.ShapeDtypeStruct((1, Bp), jnp.float32),
        grid_spec=pltpu.PrefetchScalarGridSpec(
            num_scalar_prefetch=0,
            grid=(grid_b,),
            in_specs=[
                pl.BlockSpec((F, bt), lambda i: (0, i)),         # x^T tile
                full(w1), full(b1),
                full(w2), full(b2),
                full(w3), full(b3),
                full(w4), full(b4),
            ],
            out_specs=pl.BlockSpec((1, bt), lambda i: (0, i)),   # lane-dense
        ),
        compiler_params=pltpu.CompilerParams(
            dimension_semantics=("parallel",),
            vmem_limit_bytes=16 * 1024 * 1024,   # explicit cap; far above need
        ),
    )(xt, w1, b1, w2, b2, w3, b3, w4, b4)

    return out[0, :B].reshape(B, 1)


def reference_forward(x, params):
    """Pure-JAX reference (and small-batch fast path)."""
    h = jnp.maximum(x @ params["w1"].T + params["b1"].T, 0.0)
    h = jnp.maximum(h @ params["w2"].T + params["b2"].T, 0.0)
    h = jnp.maximum(h @ params["w3"].T + params["b3"].T, 0.0)
    return h @ params["w4"].T + params["b4"].T


def neural_net_forward(x, params, *, batch_tile=512,
                       compute_dtype=jnp.float32, min_kernel_batch=256):
    """Forward pass matching the PyTorch NeuralNet module.

    Batches smaller than `min_kernel_batch` go straight to the fused XLA dot
    chain: at that size kernel-launch + DMA setup dominates the ~230 KFLOP of
    work on every TPU generation.
    """
    if x.shape[0] < min_kernel_batch:
        return reference_forward(x, params)
    return mlp_pallas(x, params, batch_tile=batch_tile,
                      compute_dtype=compute_dtype)


def init_params(key, input_size):
    """Deterministic init matching torch.nn.Linear's layer shapes/scales.

    Weights are (out_features, in_features), biases (out_features, 1) -
    PyTorch's native layout, which is exactly what the transposed kernel wants.
    """
    dims = [(input_size, 128), (128, 64), (64, 32), (32, 1)]
    params = {}
    for idx, (fan_in, fan_out) in enumerate(dims, start=1):
        key, kw, kb = jax.random.split(key, 3)
        bound = 1.0 / (fan_in ** 0.5)
        params[f"w{idx}"] = jax.random.uniform(
            kw, (fan_out, fan_in), jnp.float32, minval=-bound, maxval=bound)
        params[f"b{idx}"] = jax.random.uniform(
            kb, (fan_out, 1), jnp.float32, minval=-bound, maxval=bound)
    return params


# ----------------------------------------------------------------------------
# Self-test
# ----------------------------------------------------------------------------
if __name__ == "__main__":
    key = jax.random.PRNGKey(0)
    k_x, k_p = jax.random.split(key)

    input_size = 32   # X_train.shape[1] in the reference script
    params = init_params(k_p, input_size)

    # 1) Main kernel path: batch large enough to fill tiles and give the grid
    #    two parallel steps (both v7x TensorCores busy).
    B = 512
    x = jax.random.normal(k_x, (B, input_size), jnp.float32)
    out = jax.block_until_ready(neural_net_forward(x, params))
    ref = reference_forward(x, params)
    assert out.shape == (B, 1)
    assert jnp.allclose(out, ref, atol=1e-3, rtol=1e-3), "f32 kernel mismatch"

    # 2) Ragged batch: exercises pl.cdiv grid + zero-padding + result slicing.
    out2 = jax.block_until_ready(neural_net_forward(x[:300], params))
    assert out2.shape == (300, 1)
    assert jnp.allclose(out2, ref[:300], atol=1e-3, rtol=1e-3), "ragged mismatch"

    # 3) bf16 matmul operands (f32 accumulate, f32 bias/ReLU) - MXU fast path.
    out3 = jax.block_until_ready(
        neural_net_forward(x, params, compute_dtype=jnp.bfloat16))
    assert jnp.allclose(out3, ref, atol=5e-2, rtol=5e-2), "bf16 kernel mismatch"

    # 4) Tiny batch bypasses the kernel entirely (pure XLA path).
    out4 = jax.block_until_ready(neural_net_forward(x[:16], params))
    assert jnp.allclose(out4, ref[:16], atol=1e-5, rtol=1e-5), "bypass mismatch"

    print("KERNEL_OK")
</pallas_src>

<mosaic_0001>
module attributes {stable_mosaic.version = 11 : i64} {
  func.func @_mlp_kernel(%arg0: i32, %arg1: memref<32x256xf32, #tpu.memory_space<vmem>>, %arg2: memref<128x32xf32, #tpu.memory_space<vmem>>, %arg3: memref<128x1xf32, #tpu.memory_space<vmem>>, %arg4: memref<64x128xf32, #tpu.memory_space<vmem>>, %arg5: memref<64x1xf32, #tpu.memory_space<vmem>>, %arg6: memref<32x64xf32, #tpu.memory_space<vmem>>, %arg7: memref<32x1xf32, #tpu.memory_space<vmem>>, %arg8: memref<1x32xf32, #tpu.memory_space<vmem>>, %arg9: memref<1x1xf32, #tpu.memory_space<vmem>>, %arg10: memref<1x256xf32, #tpu.memory_space<vmem>>) attributes {dimension_semantics = [#tpu.dimension_semantics<parallel>], iteration_bounds = array<i64: 2>, scalar_prefetch = 0 : i64, scratch_operands = 0 : i64, tpu.core_type = #tpu.core_type<tc>, window_params = [{transform_indices = @transform_0, window_bounds = array<i64: 32, 256>}, {pipeline_mode = #tpu.pipeline_mode<synchronous>, transform_indices = @transform_1, window_bounds = array<i64: 128, 32>}, {pipeline_mode = #tpu.pipeline_mode<synchronous>, transform_indices = @transform_2, window_bounds = array<i64: 128, 1>}, {pipeline_mode = #tpu.pipeline_mode<synchronous>, transform_indices = @transform_3, window_bounds = array<i64: 64, 128>}, {pipeline_mode = #tpu.pipeline_mode<synchronous>, transform_indices = @transform_4, window_bounds = array<i64: 64, 1>}, {pipeline_mode = #tpu.pipeline_mode<synchronous>, transform_indices = @transform_5, window_bounds = array<i64: 32, 64>}, {pipeline_mode = #tpu.pipeline_mode<synchronous>, transform_indices = @transform_6, window_bounds = array<i64: 32, 1>}, {pipeline_mode = #tpu.pipeline_mode<synchronous>, transform_indices = @transform_7, window_bounds = array<i64: 1, 32>}, {pipeline_mode = #tpu.pipeline_mode<synchronous>, transform_indices = @transform_8, window_bounds = array<i64: 1, 1>}, {transform_indices = @transform_9, window_bounds = array<i64: 1, 256>}]} {
    %c0 = arith.constant 0 : index
    %c0_0 = arith.constant 0 : index
    %0 = vector.load %arg1[%c0, %c0_0] : memref<32x256xf32, #tpu.memory_space<vmem>>, vector<32x256xf32>
    %c0_1 = arith.constant 0 : index
    %c0_2 = arith.constant 0 : index
    %1 = vector.load %arg2[%c0_1, %c0_2] : memref<128x32xf32, #tpu.memory_space<vmem>>, vector<128x32xf32>
    %cst = arith.constant dense<0.000000e+00> : vector<128x256xf32>
    %2 = tpu.matmul %1, %0, %cst {dimension_numbers = #tpu.dot_dimension_numbers<[1], [0], [0], [1], [0, 0, 1, 1], [], []>} : vector<128x32xf32>, vector<32x256xf32>, vector<128x256xf32> -> vector<128x256xf32>
    %c0_3 = arith.constant 0 : index
    %c0_4 = arith.constant 0 : index
    %3 = vector.load %arg3[%c0_3, %c0_4] : memref<128x1xf32, #tpu.memory_space<vmem>>, vector<128x1xf32>
    %4 = vector.broadcast %3 : vector<128x1xf32> to vector<128x256xf32>
    %5 = arith.addf %2, %4 : vector<128x256xf32>
    %cst_5 = arith.constant 0.000000e+00 : f32
    %6 = vector.broadcast %cst_5 : f32 to vector<128x256xf32>
    %7 = arith.maximumf %5, %6 : vector<128x256xf32>
    %c0_6 = arith.constant 0 : index
    %c0_7 = arith.constant 0 : index
    %8 = vector.load %arg4[%c0_6, %c0_7] : memref<64x128xf32, #tpu.memory_space<vmem>>, vector<64x128xf32>
    %cst_8 = arith.constant dense<0.000000e+00> : vector<64x256xf32>
    %9 = tpu.matmul %8, %7, %cst_8 {dimension_numbers = #tpu.dot_dimension_numbers<[1], [0], [0], [1], [0, 0, 1, 1], [], []>} : vector<64x128xf32>, vector<128x256xf32>, vector<64x256xf32> -> vector<64x256xf32>
    %c0_9 = arith.constant 0 : index
    %c0_10 = arith.constant 0 : index
    %10 = vector.load %arg5[%c0_9, %c0_10] : memref<64x1xf32, #tpu.memory_space<vmem>>, vector<64x1xf32>
    %11 = vector.broadcast %10 : vector<64x1xf32> to vector<64x256xf32>
    %12 = arith.addf %9, %11 : vector<64x256xf32>
    %cst_11 = arith.constant 0.000000e+00 : f32
    %13 = vector.broadcast %cst_11 : f32 to vector<64x256xf32>
    %14 = arith.maximumf %12, %13 : vector<64x256xf32>
    %c0_12 = arith.constant 0 : index
    %c0_13 = arith.constant 0 : index
    %15 = vector.load %arg6[%c0_12, %c0_13] : memref<32x64xf32, #tpu.memory_space<vmem>>, vector<32x64xf32>
    %cst_14 = arith.constant dense<0.000000e+00> : vector<32x256xf32>
    %16 = tpu.matmul %15, %14, %cst_14 {dimension_numbers = #tpu.dot_dimension_numbers<[1], [0], [0], [1], [0, 0, 1, 1], [], []>} : vector<32x64xf32>, vector<64x256xf32>, vector<32x256xf32> -> vector<32x256xf32>
    %c0_15 = arith.constant 0 : index
    %c0_16 = arith.constant 0 : index
    %17 = vector.load %arg7[%c0_15, %c0_16] : memref<32x1xf32, #tpu.memory_space<vmem>>, vector<32x1xf32>
    %18 = vector.broadcast %17 : vector<32x1xf32> to vector<32x256xf32>
    %19 = arith.addf %16, %18 : vector<32x256xf32>
    %cst_17 = arith.constant 0.000000e+00 : f32
    %20 = vector.broadcast %cst_17 : f32 to vector<32x256xf32>
    %21 = arith.maximumf %19, %20 : vector<32x256xf32>
    %c0_18 = arith.constant 0 : index
    %c0_19 = arith.constant 0 : index
    %22 = vector.load %arg8[%c0_18, %c0_19] : memref<1x32xf32, #tpu.memory_space<vmem>>, vector<1x32xf32>
    %cst_20 = arith.constant dense<0.000000e+00> : vector<1x256xf32>
    %23 = tpu.matmul %22, %21, %cst_20 {dimension_numbers = #tpu.dot_dimension_numbers<[1], [0], [0], [1], [0, 0, 1, 1], [], []>} : vector<1x32xf32>, vector<32x256xf32>, vector<1x256xf32> -> vector<1x256xf32>
    %c0_21 = arith.constant 0 : index
    %c0_22 = arith.constant 0 : index
    %24 = vector.load %arg9[%c0_21, %c0_22] : memref<1x1xf32, #tpu.memory_space<vmem>>, vector<1x1xf32>
    %25 = vector.broadcast %24 : vector<1x1xf32> to vector<1x256xf32>
    %26 = arith.addf %23, %25 : vector<1x256xf32>
    %c0_23 = arith.constant 0 : index
    %c0_24 = arith.constant 0 : index
    %27 = vector.load %arg10[%c0_23, %c0_24] : memref<1x256xf32, #tpu.memory_space<vmem>>, vector<1x256xf32>
    tpu.vector_store %arg10[%c0_23, %c0_24], %26 {strides = array<i32>} : memref<1x256xf32, #tpu.memory_space<vmem>>, vector<1x256xf32>,
    return
  }
  func.func @transform_0(%arg0: i32) -> (i32, i32) {
    %c0_i32 = arith.constant 0 : i32
    %c0_i32_0 = arith.constant 0 : i32
    return %c0_i32, %arg0 : i32, i32
  }
  func.func @transform_1(%arg0: i32) -> (i32, i32) {
    %c0_i32 = arith.constant 0 : i32
    %c0_i32_0 = arith.constant 0 : i32
    %c0_i32_1 = arith.constant 0 : i32
    return %c0_i32, %c0_i32_0 : i32, i32
  }
  func.func @transform_2(%arg0: i32) -> (i32, i32) {
    %c0_i32 = arith.constant 0 : i32
    %c0_i32_0 = arith.constant 0 : i32
    %c0_i32_1 = arith.constant 0 : i32
    return %c0_i32, %c0_i32_0 : i32, i32
  }
  func.func @transform_3(%arg0: i32) -> (i32, i32) {
    %c0_i32 = arith.constant 0 : i32
    %c0_i32_0 = arith.constant 0 : i32
    %c0_i32_1 = arith.constant 0 : i32
    return %c0_i32, %c0_i32_0 : i32, i32
  }
  func.func @transform_4(%arg0: i32) -> (i32, i32) {
    %c0_i32 = arith.constant 0 : i32
    %c0_i32_0 = arith.constant 0 : i32
    %c0_i32_1 = arith.constant 0 : i32
    return %c0_i32, %c0_i32_0 : i32, i32
  }
  func.func @transform_5(%arg0: i32) -> (i32, i32) {
    %c0_i32 = arith.constant 0 : i32
    %c0_i32_0 = arith.constant 0 : i32
    %c0_i32_1 = arith.constant 0 : i32
    return %c0_i32, %c0_i32_0 : i32, i32
  }
  func.func @transform_6(%arg0: i32) -> (i32, i32) {
    %c0_i32 = arith.constant 0 : i32
    %c0_i32_0 = arith.constant 0 : i32
    %c0_i32_1 = arith.constant 0 : i32
    return %c0_i32, %c0_i32_0 : i32, i32
  }
  func.func @transform_7(%arg0: i32) -> (i32, i32) {
    %c0_i32 = arith.constant 0 : i32
    %c0_i32_0 = arith.constant 0 : i32
    %c0_i32_1 = arith.constant 0 : i32
    return %c0_i32, %c0_i32_0 : i32, i32
  }
  func.func @transform_8(%arg0: i32) -> (i32, i32) {
    %c0_i32 = arith.constant 0 : i32
    %c0_i32_0 = arith.constant 0 : i32
    %c0_i32_1 = arith.constant 0 : i32
    return %c0_i32, %c0_i32_0 : i32, i32
  }
  func.func @transform_9(%arg0: i32) -> (i32, i32) {
    %c0_i32 = arith.constant 0 : i32
    %c0_i32_0 = arith.constant 0 : i32
    return %c0_i32, %arg0 : i32, i32
  }
}

</mosaic_0001>

<bundles_post_ra>
// kernel: tpu_custom_call.1
= control target key start
LH: loop header
LB: loop body
LE: loop exit
PB: predicated region body
PF: predicated region fallthrough
CT: control target
= control target key end

     0   :  { %s1669_s0 = inlined_call_operand.vmem [shape: f32[32,512], index: 0, kind: input, shape index: {}]   ;;  %s1670_s1 = inlined_call_operand.vmem [shape: f32[128,32], index: 1, kind: input, shape index: {}]   ;;  %s1671_s2 = inlined_call_operand.vmem [shape: f32[128,1], index: 2, kind: input, shape index: {}]   ;;  %s1672_s3 = inlined_call_operand.vmem [shape: f32[64,128], index: 3, kind: input, shape index: {}]   ;;  %s1673_s4 = inlined_call_operand.vmem [shape: f32[64,1], index: 4, kind: input, shape index: {}]   ;;  %s1674_s5 = inlined_call_operand.vmem [shape: f32[32,64], index: 5, kind: input, shape index: {}]   ;;  %s1675_s6 = inlined_call_operand.vmem [shape: f32[32,1], index: 6, kind: input, shape index: {}]   ;;  %s1676_s7 = inlined_call_operand.vmem [shape: f32[1,32], index: 7, kind: input, shape index: {}]   ;;  %s1677_s8 = inlined_call_operand.<no memory space> [shape: f32[1,1], index: 8, kind: input, shape index: {}]   ;;  %s1678_s9 = inlined_call_operand.hbm [shape: f32[1,512], index: 9, kind: output, shape index: {}]  }
   0x1   :  { %v14_v0 = vstv %s1677_s8 }
   0x2   :  { %15 = vst [vmem:[#allocation2] sm:$0x1] %v14_v0 }
   0x3   :  { %16 = vsyncpa [#allocation5], 0 }
   0x4   :  { %18 = vsyncpa [#allocation5 + $0x1], 0  ;;  %s1321_s11 = smov 0   ;;  %s1323_s12 = smov 0  }
   0x5   :  { %s1325_s13 = smov 0   ;;  %s1327_s14 = smov 0  }
   0x6 LB: > { %s1103_s8 = sadd.s32 4294967295, %s1265_s14   ;;  %s1104_s15 = sadd.s32 4294967294, %s1265_s14   ;;  %s1265_s14 = sphi %s1327_s14, %s1684_s14   ;;  %s1261_s13 = sphi %s1325_s13, %s1683_s13   ;;  %s1257_s12 = sphi %s1323_s12, %s1682_s12   ;;  %s1253_s11 = sphi %s1321_s11, %s1681_s11  }
   0x7   : > { %s1344_s16 = sadd.s32 1, %s1265_s14   ;;  %s31_s17 = sadd.s32 1, %s1261_s13 }
   0x8   : > { %s28_s18 = ssub.s32 %s1265_s14, %s1344_s16  ;;  %p38_p0 = scmp.ne.s32.totalorder %s1261_s13, %s1257_s12 }
   0x9   : > { %p29_p1 = scmp.eq.s32.totalorder %s28_s18, 0  ;;  %p39_p2 = scmp.eq.s32.totalorder %s1265_s14, 0 }
   0xa   : > { %p236_p3 = scmp.eq.s32.totalorder %s1103_s8, 1  ;;  %p241_p4 = scmp.ne.s32.totalorder %s1257_s12, %s1253_s11 }
   0xb   : > { %s1357_s19 = scalar_select %p29_p1, %s1261_s13, %s31_s17  }
   0xc   : > { %p40_p5 = por %p39_p2, %p38_p0  ;;  %p1359_p6 = por %p236_p3, %p38_p0 }
   0xd   : > { %p242_p7 = scmp.eq.s32.totalorder %s1104_s15, 1  ;;  %p1106_p9 = scmp.ge.s32.totalorder %s1265_s14, 2 }
   0xf   : > { %p1363_p8 = por %p242_p7, %p241_p4  ;;  %282 = sbr.rel (%p1106_p9) target bundleno = 32 (0x20), region = 48 }
  0x14   : > { %285 = sbr.rel (!%p40_p5) target bundleno = 32 (0x20), region = 52  ;;  %s287_s22 = sand.u32 (%p40_p5), 1, %s1261_s13  }
  0x15   : > { %s1159_s23 = sshll.u32 (%p40_p5), %s1265_s14, 4  ;;  %s1107_s24 = sshll.u32 (%p40_p5), %s287_s22, 6 }
  0x16   : > { %s292_s27 = scalar_lea.vmem (%p40_p5), %s1669_s0, %s1159_s23  ;;  %s289_s28 = scalar_lea.vmem (%p40_p5), [#allocation3], %s1107_s24 }
  0x17   : > { %v305_v1 = vld [vmem:[%s292_s27] sm:$0xff] (%p40_p5)  ;;  %v307_v2 = vld [vmem:[%s292_s27 + $0x8] sm:$0xff] (%p40_p5) }
  0x18   : > { %v309_v3 = vld [vmem:[%s292_s27 + $0x20] sm:$0xff] (%p40_p5)  ;;  %306 = vst [vmem:[%s289_s28] sm:$0xff] (%p40_p5), %v305_v1  ;;  %v311_v4 = vld [vmem:[%s292_s27 + $0x28] sm:$0xff] (%p40_p5) }
  0x19   : > { %308 = vst [vmem:[%s289_s28 + $0x8] sm:$0xff] %v307_v2  ;;  %v313_v5 = vld [vmem:[%s292_s27 + $0x40] sm:$0xff]  ;;  %v315_v6 = vld [vmem:[%s292_s27 + $0x48] sm:$0xff] }
  0x1a   : > { %310 = vst [vmem:[%s289_s28 + $0x10] sm:$0xff] %v309_v3  ;;  %v317_v7 = vld [vmem:[%s292_s27 + $0x60] sm:$0xff]  ;;  %v319_v8 = vld [vmem:[%s292_s27 + $0x68] sm:$0xff] }
  0x1b   : > { %312 = vst [vmem:[%s289_s28 + $0x18] sm:$0xff] %v311_v4 }
  0x1c   : > { %314 = vst [vmem:[%s289_s28 + $0x20] sm:$0xff] %v313_v5 }
  0x1d   : > { %316 = vst [vmem:[%s289_s28 + $0x28] sm:$0xff] %v315_v6 }
  0x1e   : > { %318 = vst [vmem:[%s289_s28 + $0x30] sm:$0xff] %v317_v7 }
  0x1f   : > { %320 = vst [vmem:[%s289_s28 + $0x38] sm:$0xff] %v319_v8 }
  0x20 PF: > { %p1110_p10 = scmp.ge.s32.totalorder %s1265_s14, 1  ;;  %p325_p11 = scmp.lt.s32.totalorder %s1265_s14, 3 }
  0x22   : > { %p326_p12 = pnand %p1110_p10, %p325_p11 }
  0x23   : > { %s1381_s10 = sand.u32 (!%p326_p12), 1, %s1257_s12   ;;  %s1156_s26 = sshll.u32 (!%p326_p12), %s1103_s8, 1 }
  0x24   : > { %329 = sbr.rel (%p326_p12) target bundleno = 847 (0x34f), region = 75  ;;  %s1111_s18 = sshll.u32 (!%p326_p12), %s1381_s10, 6 }
  0x25   : > { %s334_s24 = scalar_lea.vmem (!%p326_p12), [#allocation3], %s1111_s18  ;;  %s1112_s25 = sshll.u32 (!%p326_p12), %s1381_s10, 1 }
  0x26   : > { %s1034_s29 = scalar_lea.hbm (!%p326_p12), %s1678_s9, %s1156_s26  ;;  %s366_s30 = scalar_lea.vmem (!%p326_p12), [#allocation4], %s1112_s25 }
  0x27   : > { %s1036_s15 = sshll.u32 (!%p326_p12), %s366_s30, 4  ;;  %s1038_s17 = sshll.u32 (!%p326_p12), %s1034_s29, 4  ;;  %s1037_s15 = int_to_ptr.vmem [resolvable:$true] %s1036_s15  ;;  %s1039_s17 = int_to_ptr.hbm [resolvable:$true] %s1038_s17 }
  0x28   : > { %s1024_s8 = scalar_lea.sflag (!%p326_p12), [#allocation5], %s1381_s10  ;;  %s1217_s18 = sshra.s32 (!%p326_p12), %s1039_s17, 4  ;;  %s1218_s18 = int_to_ptr.hbm [resolvable:$true] %s1217_s18 }
  0x29   : > { %v408_v9 = vld [vmem:[%s1671_s2 + $0x78] sm:$0xff]  ;;  %v406_v10 = vld [vmem:[%s1671_s2 + $0x68] sm:$0xff]  ;;  %v1267_v11 = vmov 0   ;;  %v407_v19 = vld [vmem:[%s1671_s2 + $0x70] sm:$0xff]  ;;  %vm489_vm0 = vcmask 261120   ;;  %vm882_vm1 = vcmask 523264   ;;  %p1224_p2 = scmp.lt.s32.totalorder %s1218_s18, %s1678_s9 }
  0x2a   : > { %1200 = vset.pattern.permute.xlu0 %v1267_v11  ;;  %1201 = vset.pattern.permute.xlu1 %v1267_v11  ;;  %v404_v12 = vld [vmem:[%s1671_s2 + $0x58] sm:$0xff]  ;;  %v373_v15 = vld [vmem:[%s334_s24 + $0x20] sm:$0xff]  ;;  %v374_v16 = vld [vmem:[%s334_s24 + $0x28] sm:$0xff]  ;;  %vm1015_vm2 = vcmask 1040384   ;;  %s1219_s22 = scalar_lea.hbm %s1218_s18, 2  ;;  %s1223_s25 = scalar_lea.hbm %s1678_s9, 4 }
  0x2b   : > { %486 = vperm.xlu0 %1200, %v408_v9   ;;  %476 = vperm.xlu1 %1201, %v406_v10   ;;  %v375_v13 = vld [vmem:[%s334_s24 + $0x30] sm:$0xff]  ;;  %v376_v14 = vld [vmem:[%s334_s24 + $0x38] sm:$0xff]  ;;  %v369_v20 = vld [vmem:[%s334_s24] sm:$0xff]  ;;  %p1220_p13 = scmp.ne.s32.totalorder %s1218_s18, %s1219_s22  ;;  %p1225_p3 = scmp.lt.s32.totalorder %s1223_s25, %s1219_s22 }
  0x2c   : > { %1202 = vset.pattern.permute.xlu2 %v1267_v11  ;;  %550 = vmatpush.msra.mxu0 %v375_v13  ;;  %v371_v17 = vld [vmem:[%s334_s24 + $0x10] sm:$0xff]  ;;  %v372_v18 = vld [vmem:[%s334_s24 + $0x18] sm:$0xff]  ;;  %v370_v21 = vld [vmem:[%s334_s24 + $0x8] sm:$0xff] }
  0x2d   : > { %615 = vmatpush.msra.mxu1 %v376_v14  ;;  %466 = vperm.xlu2 %1202, %v404_v12   ;;  %v377_v22 = vld [vmem:[%s1670_s1] sm:$0xff]  ;;  %v403_v24 = vld [vmem:[%s1671_s2 + $0x50] sm:$0xff]  ;;  %v402_v25 = vld [vmem:[%s1671_s2 + $0x48] sm:$0xff]  ;;  %p1221_p0 = pnand %p1220_p13, %p1359_p6  ;;  %p1226_p4 = por %p1225_p3, %p1224_p2 }
  0x2e   : > { %551 = vmatpush.msra.mxu0 %v373_v15  ;;  %v405_v23 = vld [vmem:[%s1671_s2 + $0x60] sm:$0xff]  ;;  %v378_v26 = vld [vmem:[%s1670_s1 + $0x8] sm:$0xff]  ;;  %v400_v28 = vld [vmem:[%s1671_s2 + $0x38] sm:$0xff] }
  0x2f   : > { %616 = vmatpush.msra.mxu1 %v374_v16  ;;  %v401_v27 = vld [vmem:[%s1671_s2 + $0x40] sm:$0xff]  ;;  %v399_v29 = vld [vmem:[%s1671_s2 + $0x30] sm:$0xff]  ;;  %v398_v31 = vld [vmem:[%s1671_s2 + $0x28] sm:$0xff]  ;;  %p1222_p1 = pneg %p1221_p0 }
  0x30   : > { %552 = vmatpush.msra.mxu0 %v371_v17  ;;  %v379_v30 = vld [vmem:[%s1670_s1 + $0x10] sm:$0xff]  ;;  %v397_v32 = vld [vmem:[%s1671_s2 + $0x20] sm:$0xff]  ;;  %v396_v33 = vld [vmem:[%s1671_s2 + $0x18] sm:$0xff] }
  0x31   : > { %617 = vmatpush.msra.mxu1 %v372_v18  ;;  %v380_v34 = vld [vmem:[%s1670_s1 + $0x18] sm:$0xff]  ;;  %v395_v35 = vld [vmem:[%s1671_s2 + $0x10] sm:$0xff]  ;;  %v394_v36 = vld [vmem:[%s1671_s2 + $0x8] sm:$0xff]  ;;  %p1227_p5 = pnand %p1226_p4, %p1222_p1 }
  0x32   : > { %553 = vmatpush.msra.mxu0 %v369_v20  ;;  %v393_v37 = vld [vmem:[%s1671_s2] sm:$0xff]  ;;  %v382_v39 = vld [vmem:[%s1670_s1 + $0x28] sm:$0xff]  ;;  %v383_v40 = vld [vmem:[%s1670_s1 + $0x30] sm:$0xff] }
  0x33   : > { %481 = vperm.xlu0 %1200, %v407_v19   ;;  %618 = vmatpush.msra.mxu1 %v370_v21  ;;  %v381_v38 = vld [vmem:[%s1670_s1 + $0x20] sm:$0xff]  ;;  %v384_v41 = vld [vmem:[%s1670_s1 + $0x38] sm:$0xff]  ;;  %v713_v44 = vld [vmem:[%s1673_s4 + $0x28] sm:$0xff] }
  0x34   : > { %1113 = vmatmul.msk.f32.vlgmr.msra.gmra.mxu0 %vm489_vm0, %v377_v22  ;;  %1129 = vmatmul.msk.f32.vlgmr.msra.gmra.mxu1 %vm489_vm0, %v377_v22  ;;  %v715_v42 = vld [vmem:[%s1673_s4 + $0x38] sm:$0xff]  ;;  %v385_v43 = vld [vmem:[%s1670_s1 + $0x40] sm:$0xff]  ;;  %v386_v46 = vld [vmem:[%s1670_s1 + $0x48] sm:$0xff] }
  0x35   : > { %471 = vperm.xlu1 %1201, %v405_v23   ;;  %461 = vperm.xlu2 %1202, %v403_v24   ;;  %v712_v45 = vld [vmem:[%s1673_s4 + $0x20] sm:$0xff]  ;;  %v710_v47 = vld [vmem:[%s1673_s4 + $0x10] sm:$0xff]  ;;  %v709_v48 = vld [vmem:[%s1673_s4 + $0x8] sm:$0xff] }
  0x36   : > { %v387_v49 = vld [vmem:[%s1670_s1 + $0x50] sm:$0xff]  ;;  %v861_v50 = vld [vmem:[%s1675_s6 + $0x18] sm:$0xff]  ;;  %v858_v53 = vld [vmem:[%s1675_s6] sm:$0xff] }
  0x37   : > { %v860_v51 = vld [vmem:[%s1675_s6 + $0x10] sm:$0xff]  ;;  %v388_v52 = vld [vmem:[%s1670_s1 + $0x58] sm:$0xff]  ;;  %v962_v54 = vld [vmem:[#allocation2] sm:$0x1] }
  0x38   : > { %v389_v55 = vld [vmem:[%s1670_s1 + $0x60] sm:$0xff]  ;;  %v714_v56 = vld [vmem:[%s1673_s4 + $0x30] sm:$0xff]  ;;  %v390_v57 = vld [vmem:[%s1670_s1 + $0x68] sm:$0xff] }
  0x39   : > { %v711_v58 = vld [vmem:[%s1673_s4 + $0x18] sm:$0xff]  ;;  %v391_v59 = vld [vmem:[%s1670_s1 + $0x70] sm:$0xff]  ;;  %v708_v60 = vld [vmem:[%s1673_s4] sm:$0xff] }
  0x3a   : > { %v392_v61 = vld [vmem:[%s1670_s1 + $0x78] sm:$0xff]  ;;  %v859_v62 = vld [vmem:[%s1675_s6 + $0x8] sm:$0xff] }
  0x3b   : > { %456 = vperm.xlu0 %1200, %v402_v25  }
  0x3c   : > { %1114 = vmatmul.msk.f32.gmra.mxu0 %vm489_vm0, %v378_v26  ;;  %1130 = vmatmul.msk.f32.gmra.mxu1 %vm489_vm0, %v378_v26 }
  0x3d   : > { %451 = vperm.xlu1 %1201, %v401_v27   ;;  %446 = vperm.xlu2 %1202, %v400_v28  }
  0x43   : > { %441 = vperm.xlu0 %1200, %v399_v29  }
  0x44   : > { %1115 = vmatmul.msk.f32.gmra.mxu0 %vm489_vm0, %v379_v30  ;;  %1131 = vmatmul.msk.f32.gmra.mxu1 %vm489_vm0, %v379_v30 }
  0x45   : > { %436 = vperm.xlu1 %1201, %v398_v31   ;;  %431 = vperm.xlu2 %1202, %v397_v32  }
  0x4b   : > { %426 = vperm.xlu0 %1200, %v396_v33  }
  0x4c   : > { %1116 = vmatmul.msk.f32.gmra.mxu0 %vm489_vm0, %v380_v34  ;;  %1132 = vmatmul.msk.f32.gmra.mxu1 %vm489_vm0, %v380_v34 }
  0x4d   : > { %421 = vperm.xlu1 %1201, %v395_v35   ;;  %416 = vperm.xlu2 %1202, %v394_v36  }
  0x53   : > { %411 = vperm.xlu0 %1200, %v393_v37  }
  0x54   : > { %1117 = vmatmul.msk.f32.gmra.mxu0 %vm489_vm0, %v381_v38  ;;  %1133 = vmatmul.msk.f32.gmra.mxu1 %vm489_vm0, %v381_v38 }
  0x55   : > { %753 = vperm.xlu1 %1201, %v715_v42   ;;  %748 = vperm.xlu2 %1202, %v714_v56  }
  0x5b   : > { %743 = vperm.xlu0 %1200, %v713_v44  }
  0x5c   : > { %1118 = vmatmul.msk.f32.gmra.mxu0 %vm489_vm0, %v382_v39  ;;  %1134 = vmatmul.msk.f32.gmra.mxu1 %vm489_vm0, %v382_v39 }
  0x5d   : > { %738 = vperm.xlu1 %1201, %v712_v45   ;;  %733 = vperm.xlu2 %1202, %v711_v58  }
  0x63   : > { %728 = vperm.xlu0 %1200, %v710_v47  }
  0x64   : > { %1119 = vmatmul.msk.f32.gmra.mxu0 %vm489_vm0, %v383_v40  ;;  %1135 = vmatmul.msk.f32.gmra.mxu1 %vm489_vm0, %v383_v40 }
  0x65   : > { %723 = vperm.xlu1 %1201, %v709_v48   ;;  %718 = vperm.xlu2 %1202, %v708_v60  }
  0x6b   : > { %879 = vperm.xlu0 %1200, %v861_v50  }
  0x6c   : > { %1120 = vmatmul.msk.f32.gmra.mxu0 %vm489_vm0, %v384_v41  ;;  %1136 = vmatmul.msk.f32.gmra.mxu1 %vm489_vm0, %v384_v41 }
  0x6d   : > { %874 = vperm.xlu1 %1201, %v860_v51   ;;  %869 = vperm.xlu2 %1202, %v859_v62  }
  0x73   : > { %864 = vperm.xlu0 %1200, %v858_v53  }
  0x74   : > { %1121 = vmatmul.msk.f32.gmra.mxu0 %vm489_vm0, %v385_v43  ;;  %1137 = vmatmul.msk.f32.gmra.mxu1 %vm489_vm0, %v385_v43 }
  0x75   : > { %965 = vperm.xlu1 %1201, %v962_v54  }
  0x7c   : > { %1122 = vmatmul.msk.f32.gmra.mxu0 %vm489_vm0, %v386_v46  ;;  %1138 = vmatmul.msk.f32.gmra.mxu1 %vm489_vm0, %v386_v46 }
  0x84   : > { %1123 = vmatmul.msk.f32.gmra.mxu0 %vm489_vm0, %v387_v49  ;;  %1139 = vmatmul.msk.f32.gmra.mxu1 %vm489_vm0, %v387_v49 }
  0x87   : > { %v467_v28 = vpop.permute.xlu2 %466 }
  0x8c   : > { %1124 = vmatmul.msk.f32.gmra.mxu0 %vm489_vm0, %v388_v52  ;;  %1140 = vmatmul.msk.f32.gmra.mxu1 %vm489_vm0, %v388_v52 }
  0x8f   : > { %v462_v34 = vpop.permute.xlu2 %461 }
  0x94   : > { %1125 = vmatmul.msk.f32.gmra.mxu0 %vm489_vm0, %v389_v55  ;;  %1141 = vmatmul.msk.f32.gmra.mxu1 %vm489_vm0, %v389_v55 }
  0x97   : > { %v447_v47 = vpop.permute.xlu2 %446 }
  0x9c   : > { %1126 = vmatmul.msk.f32.gmra.mxu0 %vm489_vm0, %v390_v57  ;;  %1142 = vmatmul.msk.f32.gmra.mxu1 %vm489_vm0, %v390_v57 }
  0x9d   : > { %v487_v23 = vpop.permute.xlu0 %486  ;;  %v477_v26 = vpop.permute.xlu1 %476 }
  0xa4   : > { %1127 = vmatmul.msk.f32.gmra.mxu0 %vm489_vm0, %v391_v59  ;;  %1143 = vmatmul.msk.f32.gmra.mxu1 %vm489_vm0, %v391_v59 }
  0xa5   : > { %v482_v30 = vpop.permute.xlu0 %481 }
  0xa7   : > { %v472_v32 = vpop.permute.xlu1 %471 }
  0xac   : > { %1128 = vmatmul.msk.f32.gmra.mxu0 %vm489_vm0, %v392_v61  ;;  %1144 = vmatmul.msk.f32.gmra.mxu1 %vm489_vm0, %v392_v61 }
  0xad   : > { %v457_v35 = vpop.permute.xlu0 %456 }
  0xaf   : > { %v452_v42 = vpop.permute.xlu1 %451 }
  0xb1   : > { %v1545_v63 = vpop.f32.mrf.mxu0  ;;  %v1547_v0 = vpop.f32.mrf.mxu1 }
  0xb5   : > { %v442_v50 = vpop.permute.xlu0 %441 }
  0xb9   : > { %v1549_v1 = vpop.f32.mrf.mxu0  ;;  %v1551_v2 = vpop.f32.mrf.mxu1 }
  0xc1   : > { %v1553_v3 = vpop.f32.mrf.mxu0  ;;  %v1555_v4 = vpop.f32.mrf.mxu1 }
  0xc9   : > { %v1557_v5 = vpop.f32.mrf.mxu0  ;;  %v1559_v6 = vpop.f32.mrf.mxu1 }
  0xd1   : > { %v1561_v7 = vpop.f32.mrf.mxu0  ;;  %v1563_v8 = vpop.f32.mrf.mxu1 }
  0xd9   : > { %v1565_v9 = vpop.f32.mrf.mxu0  ;;  %v1567_v10 = vpop.f32.mrf.mxu1 }
  0xe1   : > { %v1569_v11 = vpop.f32.mrf.mxu0  ;;  %v1571_v12 = vpop.f32.mrf.mxu1 }
  0xe9   : > { %v1573_v13 = vpop.f32.mrf.mxu0  ;;  %v1575_v14 = vpop.f32.mrf.mxu1 }
  0xf1   : > { %v579_v15 = vpop.f32.mrf.mxu0  ;;  %v644_v16 = vpop.f32.mrf.mxu1 }
  0xf9   : > { %v582_v17 = vpop.f32.mrf.mxu0  ;;  %v647_v18 = vpop.f32.mrf.mxu1 }
  0xfa   : > { %v583_v61 = vadd.f32 %v582_v17, %v457_v35  ;;  %v642_v17 = vadd.f32 %v1575_v14, %v447_v47 }
 0x101   : > { %v585_v19 = vpop.f32.mrf.mxu0  ;;  %v650_v20 = vpop.f32.mrf.mxu1 }
 0x102   : > { %v586_v57 = vadd.f32 %v585_v19, %v462_v34  ;;  %v651_v59 = vadd.f32 %v650_v20, %v462_v34  ;;  %v577_v19 = vadd.f32 %v1573_v13, %v447_v47  ;;  %v427_v20 = vpop.permute.xlu0 %426  ;;  %v683_v34 = vmax.f32 %v642_v17, 0.0 }
 0x109   : > { %v588_v21 = vpop.f32.mrf.mxu0  ;;  %v653_v22 = vpop.f32.mrf.mxu1 }
 0x10a   : > { %v589_v53 = vadd.f32 %v588_v21, %v467_v28  ;;  %v654_v55 = vadd.f32 %v653_v22, %v467_v28  ;;  %v688_v21 = vmax.f32 %v586_v57, 0.0  ;;  %v689_v22 = vmax.f32 %v651_v59, 0.0  ;;  %v432_v28 = vpop.permute.xlu2 %431 }
 0x10b   : > { %v568_v14 = vadd.f32 %v1561_v7, %v432_v28 }
 0x10c   : > { %v690_v62 = vmax.f32 %v589_v53, 0.0  ;;  %v706_v53 = vld [vmem:[%s1672_s3 + $0x30] sm:$0xff] }
 0x111   : > { %v591_v24 = vpop.f32.mrf.mxu0  ;;  %v656_v25 = vpop.f32.mrf.mxu1 }
 0x112   : > { %v592_v48 = vadd.f32 %v591_v24, %v472_v32  ;;  %v657_v51 = vadd.f32 %v656_v25, %v472_v32  ;;  %v691_v24 = vmax.f32 %v654_v55, 0.0  ;;  %v437_v25 = vpop.permute.xlu1 %436 }
 0x113   : > { %v636_v13 = vadd.f32 %v1567_v10, %v437_v25  ;;  %v417_v10 = vpop.permute.xlu2 %416 }
 0x114   : > { %v692_v58 = vmax.f32 %v592_v48, 0.0  ;;  %v693_v60 = vmax.f32 %v657_v51, 0.0  ;;  %v704_v51 = vld [vmem:[%s1672_s3 + $0x20] sm:$0xff] }
 0x119   : > { %v594_v27 = vpop.f32.mrf.mxu0  ;;  %v659_v29 = vpop.f32.mrf.mxu1 }
 0x11a   : > { %v595_v43 = vadd.f32 %v594_v27, %v477_v26  ;;  %v660_v45 = vadd.f32 %v659_v29, %v477_v26  ;;  %v580_v26 = vadd.f32 %v579_v15, %v452_v42  ;;  %v645_v27 = vadd.f32 %v644_v16, %v452_v42  ;;  %v412_v42 = vpop.permute.xlu0 %411 }
 0x11b   : > { %v686_v29 = vmax.f32 %v583_v61, 0.0  ;;  %v639_v15 = vadd.f32 %v1571_v12, %v442_v50  ;;  %v571_v16 = vadd.f32 %v1565_v9, %v437_v25  ;;  %v565_v12 = vadd.f32 %v1557_v5, %v427_v20 }
 0x11c   : > { %v694_v54 = vmax.f32 %v595_v43, 0.0  ;;  %v695_v56 = vmax.f32 %v660_v45, 0.0  ;;  %v685_v32 = vmax.f32 %v645_v27, 0.0  ;;  %v630_v9 = vadd.f32 %v1559_v6, %v427_v20  ;;  %v749_v27 = vpop.permute.xlu2 %748 }
 0x11d   : > { %v559_v43 = vadd.f32 %v1549_v1, %v417_v10  ;;  %v624_v5 = vadd.f32 %v1551_v2, %v417_v10  ;;  %v621_v47 = vadd.f32 %v1547_v0, %v412_v42  ;;  %v700_v2 = vld [vmem:[%s1672_s3] sm:$0xff]  ;;  %v702_v0 = vld [vmem:[%s1672_s3 + $0x10] sm:$0xff] }
 0x11e   : > { %v675_v45 = vmax.f32 %v630_v9, 0.0 }
 0x11f   : > { %v671_v48 = vmax.f32 %v624_v5, 0.0 }
 0x121   : > { %v597_v31 = vpop.f32.mrf.mxu0  ;;  %v662_v33 = vpop.f32.mrf.mxu1 }
 0x122   : > { %v598_v37 = vadd.f32 %v597_v31, %v482_v30  ;;  %v663_v40 = vadd.f32 %v662_v33, %v482_v30  ;;  %v684_v31 = vmax.f32 %v580_v26, 0.0  ;;  %v682_v33 = vmax.f32 %v577_v19, 0.0  ;;  %v744_v19 = vpop.permute.xlu0 %743 }
 0x124   : > { %v696_v49 = vmax.f32 %v598_v37, 0.0  ;;  %v697_v52 = vmax.f32 %v663_v40, 0.0  ;;  %v422_v37 = vpop.permute.xlu1 %421 }
 0x125   : > { %v562_v40 = vadd.f32 %v1553_v3, %v422_v37  ;;  %v627_v7 = vadd.f32 %v1555_v4, %v422_v37  ;;  %v670_v4 = vmax.f32 %v559_v43, 0.0 }
 0x127   : > { %v672_v6 = vmax.f32 %v562_v40, 0.0  ;;  %v673_v3 = vmax.f32 %v627_v7, 0.0 }
 0x129   : > { %v600_v36 = vpop.f32.mrf.mxu0  ;;  %v665_v38 = vpop.f32.mrf.mxu1 }
 0x12a   : > { %v601_v39 = vadd.f32 %v600_v36, %v487_v23  ;;  %v666_v41 = vadd.f32 %v665_v38, %v487_v23  ;;  %v648_v23 = vadd.f32 %v647_v18, %v457_v35  ;;  %v574_v18 = vadd.f32 %v1569_v11, %v442_v50  ;;  %v703_v50 = vld [vmem:[%s1672_s3 + $0x18] sm:$0xff] }
 0x12b   : > { %v633_v11 = vadd.f32 %v1563_v8, %v432_v28  ;;  %v681_v36 = vmax.f32 %v639_v15, 0.0  ;;  %v678_v38 = vmax.f32 %v571_v16, 0.0 }
 0x12c   : > { %v698_v44 = vmax.f32 %v601_v39, 0.0  ;;  %v699_v46 = vmax.f32 %v666_v41, 0.0  ;;  %v687_v30 = vmax.f32 %v648_v23, 0.0  ;;  %v680_v35 = vmax.f32 %v574_v18, 0.0 }
 0x12d   : > { %v679_v39 = vmax.f32 %v636_v13, 0.0  ;;  %v676_v41 = vmax.f32 %v568_v14, 0.0  ;;  %v677_v8 = vmax.f32 %v633_v11, 0.0 }
 0x12e   : > { %756 = vmatpush.msra.mxu2 %v698_v44  ;;  %797 = vmatpush.msra.mxu3 %v699_v46  ;;  %v674_v44 = vmax.f32 %v565_v12, 0.0  ;;  %v556_v46 = vadd.f32 %v1545_v63, %v412_v42  ;;  %v701_v63 = vld [vmem:[%s1672_s3 + $0x8] sm:$0xff] }
 0x130   : > { %757 = vmatpush.msra.mxu2 %v696_v49  ;;  %798 = vmatpush.msra.mxu3 %v697_v52  ;;  %v668_v1 = vmax.f32 %v556_v46, 0.0  ;;  %v669_v49 = vmax.f32 %v621_v47, 0.0  ;;  %v705_v52 = vld [vmem:[%s1672_s3 + $0x28] sm:$0xff] }
 0x132   : > { %758 = vmatpush.msra.mxu2 %v694_v54  ;;  %799 = vmatpush.msra.mxu3 %v695_v56  ;;  %v707_v54 = vld [vmem:[%s1672_s3 + $0x38] sm:$0xff] }
 0x134   : > { %759 = vmatpush.msra.mxu2 %v692_v58  ;;  %800 = vmatpush.msra.mxu3 %v693_v60 }
 0x136   : > { %760 = vmatpush.msra.mxu2 %v690_v62  ;;  %801 = vmatpush.msra.mxu3 %v691_v24 }
 0x138   : > { %761 = vmatpush.msra.mxu2 %v688_v21  ;;  %802 = vmatpush.msra.mxu3 %v689_v22  ;;  %v754_v21 = vpop.permute.xlu1 %753 }
 0x13a   : > { %762 = vmatpush.msra.mxu2 %v686_v29  ;;  %803 = vmatpush.msra.mxu3 %v687_v30 }
 0x13c   : > { %763 = vmatpush.msra.mxu2 %v684_v31  ;;  %804 = vmatpush.msra.mxu3 %v685_v32  ;;  %v734_v31 = vpop.permute.xlu2 %733 }
 0x13e   : > { %764 = vmatpush.msra.mxu2 %v682_v33  ;;  %805 = vmatpush.msra.mxu3 %v683_v34 }
 0x140   : > { %765 = vmatpush.msra.mxu2 %v680_v35  ;;  %806 = vmatpush.msra.mxu3 %v681_v36  ;;  %v739_v29 = vpop.permute.xlu1 %738 }
 0x142   : > { %766 = vmatpush.msra.mxu2 %v678_v38  ;;  %807 = vmatpush.msra.mxu3 %v679_v39  ;;  %v729_v38 = vpop.permute.xlu0 %728 }
 0x144   : > { %767 = vmatpush.msra.mxu2 %v676_v41  ;;  %808 = vmatpush.msra.mxu3 %v677_v8 }
 0x146   : > { %768 = vmatpush.msra.mxu2 %v674_v44  ;;  %809 = vmatpush.msra.mxu3 %v675_v45  ;;  %v719_v44 = vpop.permute.xlu2 %718 }
 0x148   : > { %769 = vmatpush.msra.mxu2 %v672_v6  ;;  %810 = vmatpush.msra.mxu3 %v673_v3  ;;  %v724_v41 = vpop.permute.xlu1 %723 }
 0x14a   : > { %770 = vmatpush.msra.mxu2 %v670_v4  ;;  %811 = vmatpush.msra.mxu3 %v671_v48 }
 0x14c   : > { %771 = vmatpush.msra.mxu2 %v668_v1  ;;  %812 = vmatpush.msra.mxu3 %v669_v49 }
 0x14d   : > { %772 = vmatmul.f32.vlgmr.msra.gmra.mxu2 %v700_v2  ;;  %813 = vmatmul.f32.vlgmr.msra.gmra.mxu3 %v700_v2  ;;  %v854_v2 = vld [vmem:[%s1674_s5] sm:$0xff] }
 0x155   : > { %775 = vmatmul.f32.gmra.mxu2 %v701_v63  ;;  %816 = vmatmul.f32.gmra.mxu3 %v701_v63  ;;  %v855_v63 = vld [vmem:[%s1674_s5 + $0x8] sm:$0xff] }
 0x15d   : > { %778 = vmatmul.f32.gmra.mxu2 %v702_v0  ;;  %819 = vmatmul.f32.gmra.mxu3 %v702_v0  ;;  %v856_v0 = vld [vmem:[%s1674_s5 + $0x10] sm:$0xff] }
 0x165   : > { %781 = vmatmul.f32.gmra.mxu2 %v703_v50  ;;  %822 = vmatmul.f32.gmra.mxu3 %v703_v50  ;;  %v857_v50 = vld [vmem:[%s1674_s5 + $0x18] sm:$0xff] }
 0x16d   : > { %784 = vmatmul.f32.gmra.mxu2 %v704_v51  ;;  %825 = vmatmul.f32.gmra.mxu3 %v704_v51 }
 0x175   : > { %787 = vmatmul.f32.gmra.mxu2 %v705_v52  ;;  %828 = vmatmul.f32.gmra.mxu3 %v705_v52 }
 0x17d   : > { %790 = vmatmul.f32.gmra.mxu2 %v706_v53  ;;  %831 = vmatmul.f32.gmra.mxu3 %v706_v53 }
 0x185   : > { %793 = vmatmul.f32.gmra.mxu2 %v707_v54  ;;  %834 = vmatmul.f32.gmra.mxu3 %v707_v54 }
 0x1d0   : > { %v773_v55 = vpop.f32.mrf.mxu2  ;;  %v814_v56 = vpop.f32.mrf.mxu3 }
 0x1d1   : > { %v774_v6 = vadd.f32 %v773_v55, %v719_v44  ;;  %v815_v3 = vadd.f32 %v814_v56, %v719_v44 }
 0x1d3   : > { %v838_v1 = vmax.f32 %v774_v6, 0.0  ;;  %v839_v49 = vmax.f32 %v815_v3, 0.0 }
 0x1d8   : > { %v776_v57 = vpop.f32.mrf.mxu2  ;;  %v817_v58 = vpop.f32.mrf.mxu3 }
 0x1d9   : > { %v777_v8 = vadd.f32 %v776_v57, %v724_v41  ;;  %v818_v5 = vadd.f32 %v817_v58, %v724_v41  ;;  %v880_v57 = vpop.permute.xlu0 %879  ;;  %v875_v58 = vpop.permute.xlu1 %874 }
 0x1db   : > { %v840_v4 = vmax.f32 %v777_v8, 0.0  ;;  %v841_v48 = vmax.f32 %v818_v5, 0.0 }
 0x1e0   : > { %v779_v59 = vpop.f32.mrf.mxu2  ;;  %v820_v60 = vpop.f32.mrf.mxu3 }
 0x1e1   : > { %v780_v10 = vadd.f32 %v779_v59, %v729_v38  ;;  %v821_v7 = vadd.f32 %v820_v60, %v729_v38 }
 0x1e3   : > { %v842_v46 = vmax.f32 %v780_v10, 0.0  ;;  %v843_v47 = vmax.f32 %v821_v7, 0.0 }
 0x1e8   : > { %v782_v61 = vpop.f32.mrf.mxu2  ;;  %v823_v62 = vpop.f32.mrf.mxu3 }
 0x1e9   : > { %v783_v37 = vadd.f32 %v782_v61, %v734_v31  ;;  %v824_v9 = vadd.f32 %v823_v62, %v734_v31 }
 0x1eb   : > { %v844_v43 = vmax.f32 %v783_v37, 0.0  ;;  %v845_v45 = vmax.f32 %v824_v9, 0.0 }
 0x1f0   : > { %v785_v23 = vpop.f32.mrf.mxu2  ;;  %v826_v24 = vpop.f32.mrf.mxu3 }
 0x1f1   : > { %v786_v14 = vadd.f32 %v785_v23, %v739_v29  ;;  %v827_v11 = vadd.f32 %v826_v24, %v739_v29  ;;  %v870_v23 = vpop.permute.xlu2 %869 }
 0x1f3   : > { %v846_v40 = vmax.f32 %v786_v14, 0.0  ;;  %v847_v42 = vmax.f32 %v827_v11, 0.0 }
 0x1f8   : > { %v788_v25 = vpop.f32.mrf.mxu2  ;;  %v829_v26 = vpop.f32.mrf.mxu3 }
 0x1f9   : > { %v789_v16 = vadd.f32 %v788_v25, %v744_v19  ;;  %v830_v13 = vadd.f32 %v829_v26, %v744_v19 }
 0x1fb   : > { %v848_v12 = vmax.f32 %v789_v16, 0.0  ;;  %v849_v39 = vmax.f32 %v830_v13, 0.0  ;;  %v966_v16 = vpop.permute.xlu1 %965  ;;  %v1018_v13 = vlaneseq }
 0x1fd   : > { %vm1020_vm3 = vcmp.lt.s32.totalorder %v1018_v13, 256 }
 0x200   : > { %v791_v22 = vpop.f32.mrf.mxu2  ;;  %v832_v28 = vpop.f32.mrf.mxu3 }
 0x201   : > { %v792_v17 = vadd.f32 %v791_v22, %v749_v27  ;;  %v833_v15 = vadd.f32 %v832_v28, %v749_v27  ;;  %v865_v27 = vpop.permute.xlu0 %864 }
 0x203   : > { %v850_v35 = vmax.f32 %v792_v17, 0.0  ;;  %v851_v36 = vmax.f32 %v833_v15, 0.0  ;;  %v961_v15 = vld [vmem:[%s1676_s7] sm:$0x1] }
 0x208   : > { %v794_v20 = vpop.f32.mrf.mxu2  ;;  %v835_v18 = vpop.f32.mrf.mxu3 }
 0x209   : > { %v795_v30 = vadd.f32 %v794_v20, %v754_v21  ;;  %v836_v32 = vadd.f32 %v835_v18, %v754_v21 }
 0x20b   : > { %v852_v33 = vmax.f32 %v795_v30, 0.0  ;;  %v853_v34 = vmax.f32 %v836_v32, 0.0 }
 0x20d   : > { %903 = vmatpush.msrb.mxu2 %v852_v33  ;;  %932 = vmatpush.msrb.mxu3 %v853_v34  ;;  %v968_v33 = vperm.slane %v966_v16, 0 }
 0x20f   : > { %904 = vmatpush.msrb.mxu2 %v850_v35  ;;  %933 = vmatpush.msrb.mxu3 %v851_v36 }
 0x211   : > { %905 = vmatpush.msrb.mxu2 %v848_v12  ;;  %934 = vmatpush.msrb.mxu3 %v849_v39 }
 0x213   : > { %906 = vmatpush.msrb.mxu2 %v846_v40  ;;  %935 = vmatpush.msrb.mxu3 %v847_v42 }
 0x215   : > { %907 = vmatpush.msrb.mxu2 %v844_v43  ;;  %936 = vmatpush.msrb.mxu3 %v845_v45 }
 0x217   : > { %908 = vmatpush.msrb.mxu2 %v842_v46  ;;  %937 = vmatpush.msrb.mxu3 %v843_v47 }
 0x219   : > { %909 = vmatpush.msrb.mxu2 %v840_v4  ;;  %938 = vmatpush.msrb.mxu3 %v841_v48 }
 0x21b   : > { %910 = vmatpush.msrb.mxu2 %v838_v1  ;;  %939 = vmatpush.msrb.mxu3 %v839_v49 }
 0x21c   : > { %1145 = vmatmul.msk.f32.vlgmr.msrb.gmra.mxu2 %vm882_vm1, %v854_v2  ;;  %1149 = vmatmul.msk.f32.vlgmr.msrb.gmra.mxu3 %vm882_vm1, %v854_v2 }
 0x224   : > { %1146 = vmatmul.msk.f32.gmra.mxu2 %vm882_vm1, %v855_v63  ;;  %1150 = vmatmul.msk.f32.gmra.mxu3 %vm882_vm1, %v855_v63 }
 0x22c   : > { %1147 = vmatmul.msk.f32.gmra.mxu2 %vm882_vm1, %v856_v0  ;;  %1151 = vmatmul.msk.f32.gmra.mxu3 %vm882_vm1, %v856_v0 }
 0x234   : > { %1148 = vmatmul.msk.f32.gmra.mxu2 %vm882_vm1, %v857_v50  ;;  %1152 = vmatmul.msk.f32.gmra.mxu3 %vm882_vm1, %v857_v50 }
 0x29f   : > { %v912_v51 = vpop.f32.mrf.mxu2  ;;  %v941_v52 = vpop.f32.mrf.mxu3 }
 0x2a0   : > { %v913_v19 = vadd.f32 %v912_v51, %v865_v27  ;;  %v942_v20 = vadd.f32 %v941_v52, %v865_v27 }
 0x2a2   : > { %v953_v31 = vmax.f32 %v913_v19, 0.0  ;;  %v954_v32 = vmax.f32 %v942_v20, 0.0 }
 0x2a7   : > { %v915_v53 = vpop.f32.mrf.mxu2  ;;  %v944_v54 = vpop.f32.mrf.mxu3 }
 0x2a8   : > { %v916_v26 = vadd.f32 %v915_v53, %v870_v23  ;;  %v945_v22 = vadd.f32 %v944_v54, %v870_v23 }
 0x2aa   : > { %v955_v30 = vmax.f32 %v916_v26, 0.0  ;;  %v956_v18 = vmax.f32 %v945_v22, 0.0 }
 0x2af   : > { %v918_v55 = vpop.f32.mrf.mxu2  ;;  %v947_v56 = vpop.f32.mrf.mxu3 }
 0x2b0   : > { %v919_v60 = vadd.f32 %v918_v55, %v875_v58  ;;  %v948_v24 = vadd.f32 %v947_v56, %v875_v58 }
 0x2b2   : > { %v957_v29 = vmax.f32 %v919_v60, 0.0  ;;  %v958_v17 = vmax.f32 %v948_v24, 0.0 }
 0x2b7   : > { %v921_v59 = vpop.f32.mrf.mxu2  ;;  %v950_v62 = vpop.f32.mrf.mxu3 }
 0x2b8   : > { %v922_v61 = vadd.f32 %v921_v59, %v880_v57  ;;  %v951_v25 = vadd.f32 %v950_v62, %v880_v57 }
 0x2ba   : > { %v959_v21 = vmax.f32 %v922_v61, 0.0  ;;  %v960_v28 = vmax.f32 %v951_v25, 0.0 }
 0x2bc   : > { %984 = vmatpush.msra.mxu2 %v959_v21  ;;  %1004 = vmatpush.msra.mxu3 %v960_v28 }
 0x2be   : > { %985 = vmatpush.msra.mxu2 %v957_v29  ;;  %1005 = vmatpush.msra.mxu3 %v958_v17 }
 0x2c0   : > { %986 = vmatpush.msra.mxu2 %v955_v30  ;;  %1006 = vmatpush.msra.mxu3 %v956_v18 }
 0x2c2   : > { %987 = vmatpush.msra.mxu2 %v953_v31  ;;  %1007 = vmatpush.msra.mxu3 %v954_v32 }
 0x2c3   : > { %1153 = vmatmul.msk.f32.vlgmr.msra.gmra.mxu2 %vm489_vm0, %v961_v15  ;;  %1154 = vmatmul.msk.f32.vlgmr.msra.gmra.mxu3 %vm489_vm0, %v961_v15 }
 0x346   : > { %v989_v34 = vpop.f32.mrf.mxu2  ;;  %v1009_v14 = vpop.f32.mrf.mxu3 }
 0x347   : > { %v1010_v35 = vadd.f32 %v1009_v14, %v968_v33  ;;  %v990_v11 = vadd.f32 %v989_v34, %v968_v33 }
 0x349   : > { %v1014_v36 = vrot.slane %v1010_v35, 7 }
 0x34b   : > { %v1016_v37 = vsel %vm1015_vm2, %v990_v11, %v1014_v36 }
 0x34c   : > { %1022 = vst.msk [vmem:[%s366_s30] sm:$0x3] %vm1020_vm3, %v1016_v37 }
 0x34d   : > { %1230 = shalt.err (!%p1227_p5)
}
 0x34e   : > { %1160 = dma.vmem_to_hbm [thread:$0]  (%p1359_p6), %s1037_s15, 32, %s1039_s17, %s1024_s8  }
 0x34f PF: > { %s1050_s10 = sand.u32 1, %s1253_s11   ;;  %p1163_p7 = pnand %p1106_p9, %p1363_p8 }
 0x350   : > { %s1051_s28 = scalar_lea.sflag [#allocation5], %s1050_s10 }
 0x351   : > { %p1164_p10 = pneg %p1163_p7 }
 0x353   : > { %1248 = dma.done.wait (%p1164_p10), %s1051_s28, 32  }
 0x354   : > { %1250 = vsyncadd (%p1164_p10), %s1051_s28, 4294967264  ;;  %p21_p11 = scmp.ge.s32.totalorder %s1344_s16, 4   ;;  %s1681_s11 = smov %s1257_s12 }
 0x355   : > { %s1682_s12 = smov %s1261_s13  ;;  %s1683_s13 = smov %s1357_s19 }
 0x356   : > { %s1684_s14 = smov %s1344_s16  ;;  %23 = sbr.rel (!%p21_p11) target bundleno = 6 (0x6), region = 119 }
 0x35b   :  { %1057 = vsyncpa [#allocation5], 1 }
 0x35c   :  { %1059 = vsyncpa [#allocation5 + $0x1], 1 }

</bundles_post_ra>
